<compile_context>
chip_gen: v7x
topology: tpu7x:2x2x1
jax: 0.10.0
libtpu: 0.0.40
codegen_flags: <defaults>
</compile_context>

<pallas_src>
import numpy as np
import jax
import jax.numpy as jnp
from jax.experimental import pallas as pl
from jax.experimental.pallas import tpu as pltpu


# ---------------------------------------------------------------------------
# Pallas kernel: resident (2K,2K) matrix  @  lane-tiled (2K, TILE_N) slab
# ---------------------------------------------------------------------------
def _block_matmul_kernel(a_ref, b_ref, o_ref):
    o_ref[...] = jnp.dot(a_ref[...], b_ref[...],
                         preferred_element_type=jnp.float32)


def _round_up(n, m):
    return ((n + m - 1) // m) * m


def _pick_tile_n(k2, n_pad, in_bytes, budget=24 * 1024 * 1024):
    """Largest lane tile (multiple of 128, <= 2048) whose double-buffered
    input+output tiles plus the resident matrix fit under `budget` bytes."""
    tile = 2048
    while tile > 128:
        need = (2 * k2 * tile * in_bytes        # double-buffered B tile
                + 2 * k2 * tile * 4             # double-buffered f32 out tile
                + 2 * k2 * k2 * in_bytes)       # resident A (2 buffers worst case)
        if need <= budget:
            break
        tile //= 2
    return min(tile, n_pad)


def block_complex_matmul(a_blk, b):
    """(2K,2K) @ (2K,N) real matmul via Pallas with lane tiling.

    `a_blk` is the block-complex embedding of a (K,K) complex matrix and `b`
    is the stacked [re; im] slab; the product is the stacked complex result.
    """
    k2 = a_blk.shape[0]
    n = b.shape[1]
    in_bytes = a_blk.dtype.itemsize
    tile_n = _pick_tile_n(k2, n, in_bytes)
    grid = (pl.cdiv(n, tile_n),)

    cost = pl.CostEstimate(
        flops=2 * k2 * k2 * n,
        transcendentals=0,
        bytes_accessed=k2 * k2 * in_bytes + k2 * n * in_bytes + k2 * n * 4,
    )
    return pl.pallas_call(
        _block_matmul_kernel,
        grid=grid,
        in_specs=[pl.BlockSpec((k2, k2), lambda i: (0, 0)),      # A resident
                  pl.BlockSpec((k2, tile_n), lambda i: (0, i))],  # B lane tile
        out_specs=pl.BlockSpec((k2, tile_n), lambda i: (0, i)),
        out_shape=jax.ShapeDtypeStruct((k2, n), jnp.float32),
        compiler_params=pltpu.CompilerParams(
            dimension_semantics=("parallel",)),
        cost_estimate=cost,
    )(a_blk, b)


# ---------------------------------------------------------------------------
# Gate (forward-pass semantics of deepquantum.photonic.operation.Gate)
# ---------------------------------------------------------------------------
class GatePallas:
    def __init__(self, nmode, wires, cutoff, key, use_bf16=True):
        if isinstance(wires, int):
            wires = [wires]
        assert all(0 <= w < nmode for w in wires) and len(set(wires)) == len(wires)
        self.nmode = nmode
        self.wires = list(wires)
        self.cutoff = cutoff
        self.mxu_dtype = jnp.bfloat16 if use_bf16 else jnp.float32

        nt = len(self.wires)
        dim = cutoff ** nt
        k1, k2, k3, k4 = jax.random.split(key, 4)
        # Gate.get_matrix_state is abstract in the base class -> synthesize a
        # deterministic local Fock-space transformation (complex, dim x dim).
        self.mat_state_re = jax.random.normal(k1, (dim, dim), jnp.float32)
        self.mat_state_im = jax.random.normal(k2, (dim, dim), jnp.float32)
        # Block-complex embedding, built once and cast to the MXU dtype.
        a_top = jnp.concatenate([self.mat_state_re, -self.mat_state_im], axis=1)
        a_bot = jnp.concatenate([self.mat_state_im, self.mat_state_re], axis=1)
        self.a_blk = jnp.concatenate([a_top, a_bot], axis=0).astype(self.mxu_dtype)
        # Local affine symplectic transform (xxpp order) for the Gaussian branch.
        self.matrix_xp = jax.random.normal(k3, (2 * nt, 2 * nt), jnp.float32)
        self.vector_xp = jax.random.normal(k4, (2 * nt, 1), jnp.float32)

    # --- torch.Tensor branch: Gate.op_state_tensor ---------------------------
    def op_state_tensor(self, x):
        nt = len(self.wires)
        cutoff = self.cutoff
        K = cutoff ** nt
        wires = [i + 1 for i in self.wires]
        pm_shape = list(range(self.nmode + 1))
        for i in wires:
            pm_shape.remove(i)
        pm_shape = wires + pm_shape

        # glue: permute acted-on wire axes to the front, flatten the rest to lanes
        xp = jnp.transpose(x, pm_shape).reshape(K, -1)
        n = xp.shape[1]
        b = jnp.concatenate([jnp.real(xp).astype(jnp.float32),
                             jnp.imag(xp).astype(jnp.float32)], axis=0)  # (2K, N)
        # lane-dense padding to a multiple of 128 (avoids masked partial stores)
        n_pad = max(128, _round_up(n, 128))
        if n_pad != n:
            b = jnp.pad(b, ((0, 0), (0, n_pad - n)))
        b = b.astype(self.mxu_dtype)

        # hot path: one block-complex matmul in the Pallas kernel
        o = block_complex_matmul(self.a_blk, b)          # (2K, n_pad) f32
        y = jax.lax.complex(o[:K, :n], o[K:, :n])
        y = y.reshape([cutoff] * nt + [-1] + [cutoff] * (self.nmode - nt))
        inv = list(np.argsort(np.array(pm_shape)))
        return jnp.transpose(y, inv)

    # --- list branch: Gate.op_gaussian ---------------------------------------
    # Per perf review: the (2nt x 2nt) matmuls are far too small for separate
    # pallas_call launches, so this branch stays in plain XLA (einsum fuses
    # with the surrounding gathers/concats).
    def op_gaussian(self, x):
        cov, mean = x
        nt = len(self.wires)
        nm = self.nmode
        wx1 = list(range(self.wires[0]))
        wx = list(self.wires)
        wx2 = list(range(self.wires[-1] + 1, nm))
        wp1 = [w + nm for w in wx1]
        wp = [w + nm for w in wx]
        wp2 = [w + nm for w in wx2]
        idx = wx + wp

        cov_row = jnp.einsum('ij,bjk->bik', self.matrix_xp, cov[:, idx, :])
        cov = jnp.concatenate(
            [cov[:, wx1, :], cov_row[:, :nt, :], cov[:, wx2, :],
             cov[:, wp1, :], cov_row[:, nt:, :], cov[:, wp2, :]], axis=1)

        cov_col = jnp.einsum('bij,kj->bik', cov[:, :, idx], self.matrix_xp)
        cov = jnp.concatenate(
            [cov[:, :, wx1], cov_col[:, :, :nt], cov[:, :, wx2],
             cov[:, :, wp1], cov_col[:, :, nt:], cov[:, :, wp2]], axis=2)

        mean_loc = (jnp.einsum('ij,bjk->bik', self.matrix_xp, mean[:, idx, :])
                    + self.vector_xp)
        mean = jnp.concatenate(
            [mean[:, wx1, :], mean_loc[:, :nt, :], mean[:, wx2, :],
             mean[:, wp1, :], mean_loc[:, nt:, :], mean[:, wp2, :]], axis=1)
        return [cov, mean]

    def forward(self, x):
        # TODO(synk): MatrixProductState branch (op_mps / get_mpo) needs SVD-based
        # MPO/MPS contraction; no clean Pallas equivalent, not implemented here.
        if isinstance(x, (list, tuple)):
            return self.op_gaussian(list(x))
        return self.op_state_tensor(x)


# ---------------------------------------------------------------------------
# Pure-JAX references for correctness checks
# ---------------------------------------------------------------------------
def ref_op_state_tensor(mat_c, x, nmode, cutoff, wires):
    nt = len(wires)
    w = [i + 1 for i in wires]
    pm = list(range(nmode + 1))
    for i in w:
        pm.remove(i)
    pm = w + pm
    xf = jnp.transpose(x, pm).reshape(cutoff ** nt, -1)
    y = mat_c @ xf
    y = y.reshape([cutoff] * nt + [-1] + [cutoff] * (nmode - nt))
    return jnp.transpose(y, list(np.argsort(np.array(pm))))


def ref_op_gaussian(mat_xp, vec_xp, cov, mean, nmode, wires):
    nt = len(wires)
    wx1 = list(range(wires[0]))
    wx = list(wires)
    wx2 = list(range(wires[-1] + 1, nmode))
    wp1 = [w + nmode for w in wx1]
    wp = [w + nmode for w in wx]
    wp2 = [w + nmode for w in wx2]
    idx = wx + wp
    cov_row = jnp.einsum('ij,bjk->bik', mat_xp, cov[:, idx, :])
    cov = jnp.concatenate([cov[:, wx1, :], cov_row[:, :nt, :], cov[:, wx2, :],
                           cov[:, wp1, :], cov_row[:, nt:, :], cov[:, wp2, :]], axis=1)
    cov_col = jnp.einsum('bij,kj->bik', cov[:, :, idx], mat_xp)
    cov = jnp.concatenate([cov[:, :, wx1], cov_col[:, :, :nt], cov[:, :, wx2],
                           cov[:, :, wp1], cov_col[:, :, nt:], cov[:, :, wp2]], axis=2)
    mean_loc = jnp.einsum('ij,bjk->bik', mat_xp, mean[:, idx, :]) + vec_xp
    mean = jnp.concatenate([mean[:, wx1, :], mean_loc[:, :nt, :], mean[:, wx2, :],
                            mean[:, wp1, :], mean_loc[:, nt:, :], mean[:, wp2, :]], axis=1)
    return cov, mean


# ---------------------------------------------------------------------------
if __name__ == "__main__":
    nmode, cutoff, wires, batch = 4, 4, [1, 2], 2

    gate = GatePallas(nmode=nmode, wires=wires, cutoff=cutoff,
                      key=jax.random.PRNGKey(0))

    kx1, kx2, kc, km = jax.random.split(jax.random.PRNGKey(1), 4)

    # --- Fock state tensor branch (torch.Tensor path) ---
    xr = jax.random.normal(kx1, [batch] + [cutoff] * nmode, jnp.float32)
    xi = jax.random.normal(kx2, [batch] + [cutoff] * nmode, jnp.float32)
    x = jax.lax.complex(xr, xi)                      # (2, 4, 4, 4, 4) complex64

    y = gate.forward(x)
    y = jax.block_until_ready(y)

    # Reference uses the same bf16-rounded operands the MXU sees (accumulation
    # stays f32 on both sides), so the comparison can be tight.
    def rb(v):
        return v.astype(jnp.bfloat16).astype(jnp.float32)

    mat_c_ref = jax.lax.complex(rb(gate.mat_state_re), rb(gate.mat_state_im))
    x_ref_in = jax.lax.complex(rb(xr), rb(xi))
    y_ref = ref_op_state_tensor(mat_c_ref, x_ref_in, nmode, cutoff, wires)
    np.testing.assert_allclose(np.asarray(y), np.asarray(y_ref),
                               rtol=2e-3, atol=2e-3)

    # --- Gaussian branch (list path) ---
    c = jax.random.normal(kc, (batch, 2 * nmode, 2 * nmode), jnp.float32)
    cov = c @ jnp.swapaxes(c, -1, -2)                # symmetric cov, (2, 8, 8)
    mean = jax.random.normal(km, (batch, 2 * nmode, 1), jnp.float32)   # (2, 8, 1)

    cov_out, mean_out = gate.forward([cov, mean])
    jax.block_until_ready((cov_out, mean_out))

    cov_ref, mean_ref = ref_op_gaussian(gate.matrix_xp, gate.vector_xp,
                                        cov, mean, nmode, wires)
    np.testing.assert_allclose(np.asarray(cov_out), np.asarray(cov_ref),
                               rtol=1e-4, atol=1e-4)
    np.testing.assert_allclose(np.asarray(mean_out), np.asarray(mean_ref),
                               rtol=1e-4, atol=1e-4)

    print("KERNEL_OK")
</pallas_src>

<mosaic_0001>
module attributes {stable_mosaic.version = 11 : i64} {
  func.func @_block_matmul_kernel(%arg0: i32, %arg1: memref<32x32xbf16, #tpu.memory_space<vmem>>, %arg2: memref<32x128xbf16, #tpu.memory_space<vmem>>, %arg3: memref<32x128xf32, #tpu.memory_space<vmem>>) attributes {dimension_semantics = [#tpu.dimension_semantics<parallel>], iteration_bounds = array<i64: 1>, scalar_prefetch = 0 : i64, scratch_operands = 0 : i64, tpu.core_type = #tpu.core_type<tc>, window_params = [{pipeline_mode = #tpu.pipeline_mode<synchronous>, transform_indices = @transform_0, window_bounds = array<i64: 32, 32>}, {transform_indices = @transform_1, window_bounds = array<i64: 32, 128>}, {transform_indices = @transform_2, window_bounds = array<i64: 32, 128>}]} {
    %c0 = arith.constant 0 : index
    %c0_0 = arith.constant 0 : index
    %0 = vector.load %arg1[%c0, %c0_0] : memref<32x32xbf16, #tpu.memory_space<vmem>>, vector<32x32xbf16>
    %c0_1 = arith.constant 0 : index
    %c0_2 = arith.constant 0 : index
    %1 = vector.load %arg2[%c0_1, %c0_2] : memref<32x128xbf16, #tpu.memory_space<vmem>>, vector<32x128xbf16>
    %cst = arith.constant dense<0.000000e+00> : vector<32x128xf32>
    %2 = tpu.matmul %0, %1, %cst {dimension_numbers = #tpu.dot_dimension_numbers<[1], [0], [0], [1], [0, 0, 1, 1], [], []>} : vector<32x32xbf16>, vector<32x128xbf16>, vector<32x128xf32> -> vector<32x128xf32>
    %c0_3 = arith.constant 0 : index
    %c0_4 = arith.constant 0 : index
    %3 = vector.load %arg3[%c0_3, %c0_4] : memref<32x128xf32, #tpu.memory_space<vmem>>, vector<32x128xf32>
    tpu.vector_store %arg3[%c0_3, %c0_4], %2 {strides = array<i32>} : memref<32x128xf32, #tpu.memory_space<vmem>>, vector<32x128xf32>,
    return
  }
  func.func @transform_0(%arg0: i32) -> (i32, i32) {
    %c0_i32 = arith.constant 0 : i32
    %c0_i32_0 = arith.constant 0 : i32
    %c0_i32_1 = arith.constant 0 : i32
    return %c0_i32, %c0_i32_0 : i32, i32
  }
  func.func @transform_1(%arg0: i32) -> (i32, i32) {
    %c0_i32 = arith.constant 0 : i32
    %c0_i32_0 = arith.constant 0 : i32
    return %c0_i32, %arg0 : i32, i32
  }
  func.func @transform_2(%arg0: i32) -> (i32, i32) {
    %c0_i32 = arith.constant 0 : i32
    %c0_i32_0 = arith.constant 0 : i32
    return %c0_i32, %arg0 : i32, i32
  }
}

</mosaic_0001>

<bundles_post_ra>
// kernel: tpu_custom_call.1
= control target key start
LH: loop header
LB: loop body
LE: loop exit
PB: predicated region body
PF: predicated region fallthrough
CT: control target
= control target key end

     0   :  { %7 = vsyncpa [#allocation3], 0  ;;  %s308_s0 = inlined_call_operand.hbm [shape: bf16[32,32], index: 0, kind: input, shape index: {}]   ;;  %s309_s1 = inlined_call_operand.hbm [shape: bf16[32,128], index: 1, kind: input, shape index: {}]   ;;  %s310_s2 = inlined_call_operand.hbm [shape: f32[32,128], index: 2, kind: output, shape index: {}]  }
   0x1   :  { %8 = vsyncpa [#allocation6], 0 }
   0x2   :  { %9 = vsyncpa [#allocation4], 0  ;;  %s250_s9 = smov [#allocation2]   ;;  %s178_s13 = scalar_lea.hbm %s308_s0, 256 }
   0x3   :  { %s15_s10 = sshll.u32 %s250_s9, 4  ;;  %p179_p0 = scmp.ne.s32.totalorder %s308_s0, %s178_s13  ;;  %s16_s10 = int_to_ptr.vmem [resolvable:$true] %s15_s10 }
   0x4   :  { %p182_p1 = scmp.lt.u32.totalorder %s178_s13, %s308_s0 }
   0x6   :  { %p184_p2 = pnand %p182_p1, %p179_p0 }
   0x8   :  { %187 = shalt.err (!%p184_p2)
}
   0x9   :  { %s188_s18 = scalar_lea.vmem %s16_s10, 256  ;;  %p193_p4 = scmp.lt.s32.totalorder %s16_s10, %s16_s10 }
   0xa   :  { %p189_p3 = scmp.ne.s32.totalorder %s16_s10, %s188_s18  ;;  %p194_p5 = scmp.lt.s32.totalorder %s188_s18, %s188_s18 }
   0xc   :  { %p195_p6 = por %p194_p5, %p193_p4 }
   0xe   :  { %p196_p7 = pnand %p195_p6, %p189_p3 }
  0x10   :  { %199 = shalt.err (!%p196_p7)
}
  0x11   :  { %s251_s19 = smov 64   ;;  %s252_s20 = smov 4  }
  0x12   :  { %21 = dma.hbm_to_vmem [thread:$0]  %s308_s0, 256, %s16_s10, [#allocation3], %s251_s19, %s251_s19, %s252_s20  }
  0x13   :  { %s253_s23 = smov [#allocation5]   ;;  %s200_s27 = scalar_lea.hbm %s309_s1, 256 }
  0x14   :  { %s27_s24 = sshll.u32 %s253_s23, 4  ;;  %p201_p8 = scmp.ne.s32.totalorder %s309_s1, %s200_s27  ;;  %s28_s24 = int_to_ptr.vmem [resolvable:$true] %s27_s24 }
  0x15   :  { %p204_p9 = scmp.lt.u32.totalorder %s200_s27, %s309_s1 }
  0x17   :  { %p206_p10 = pnand %p204_p9, %p201_p8 }
  0x19   :  { %209 = shalt.err (!%p206_p10)
}
  0x1a   :  { %s210_s4 = scalar_lea.vmem %s28_s24, 256  ;;  %p215_p12 = scmp.lt.s32.totalorder %s28_s24, %s28_s24 }
  0x1b   :  { %p211_p11 = scmp.ne.s32.totalorder %s28_s24, %s210_s4  ;;  %p216_p13 = scmp.lt.s32.totalorder %s210_s4, %s210_s4 }
  0x1d   :  { %p217_p0 = por %p216_p13, %p215_p12 }
  0x1f   :  { %p218_p1 = pnand %p217_p0, %p211_p11 }
  0x21   :  { %221 = shalt.err (!%p218_p1)
}
  0x22   :  { %33 = dma.hbm_to_vmem [thread:$0]  %s309_s1, 256, %s28_s24, [#allocation6], %s251_s19, %s251_s19, %s252_s20  }
  0x23   :  { %244 = dma.done.wait [#allocation3], 256  }
  0x24   :  { %245 = vsyncadd [#allocation3], 4294967040 }
  0x25   :  { %246 = dma.done.wait [#allocation6], 256  }
  0x26   :  { %247 = vsyncadd [#allocation6], 4294967040  ;;  %v174_v0 = vld [vmem:[#allocation5] sm:$0xff]   ;;  %v175_v1 = vld [vmem:[#allocation5 + $0x8] sm:$0xff]   ;;  %vm71_vm0 = vcmask 261120   ;;  %s254_s6 = smov [#allocation7]  }
  0x27   :  { %159 = vmatprep.subr.bf16.mxu0 %v174_v0  ;;  %v176_v2 = vld [vmem:[#allocation2] sm:$0xff]   ;;  %v177_v3 = vld [vmem:[#allocation2 + $0x8] sm:$0xff]   ;;  %s136_s7 = sshll.u32 %s254_s6, 4  ;;  %s137_s7 = int_to_ptr.vmem [resolvable:$true] %s136_s7 }
  0x28   :  { %160 = vmatpush3.bf16.msra.mxu0 %v174_v0  ;;  %163 = vmatprep.mubr.msk.bf16.mxu0 %vm71_vm0, %v176_v2  ;;  %s222_s1 = scalar_lea.vmem %s137_s7, 512  ;;  %p227_p3 = scmp.lt.s32.totalorder %s137_s7, %s137_s7 }
  0x29   :  { %161 = vmatprep.subr.bf16.mxu0 %v175_v1  ;;  %p223_p2 = scmp.ne.s32.totalorder %s137_s7, %s222_s1  ;;  %p228_p4 = scmp.lt.s32.totalorder %s222_s1, %s222_s1 }
  0x2b   :  { %p229_p5 = por %p228_p4, %p227_p3 }
  0x2c   :  { %162 = vmatpush3.bf16.msra.mxu0 %v175_v1 }
  0x2d   :  { %p230_p6 = pnand %p229_p5, %p223_p2 }
  0x2f   :  { %164 = vmatmul.mubr.msk.bf16.vlgmr.msra.gmra.mrb[0].mxu0 %vm71_vm0, %v177_v3 }
 0x102   :  { %v165_v4 = vpop.f32.mrb[0].mxu0 }
 0x103   :  { %129 = vst [vmem:[#allocation7 + $0x10] sm:$0xff] %v165_v4  ;;  %v112_v5 = vpop.f32.mrb[1].mxu0 }
 0x104   :  { %127 = vst [vmem:[#allocation7] sm:$0xff] %v112_v5  ;;  %v166_v6 = vpop.f32.mrb[2].mxu0 }
 0x105   :  { %130 = vst [vmem:[#allocation7 + $0x18] sm:$0xff] %v166_v6  ;;  %v115_v7 = vpop.f32.mrb[3].mxu0 }
 0x106   :  { %128 = vst [vmem:[#allocation7 + $0x8] sm:$0xff] %v115_v7 }
 0x107   :  { %233 = shalt.err (!%p230_p6)
}
 0x108   :  { %s234_s10 = scalar_lea.hbm %s310_s2, 512 }
 0x109   :  { %p235_p7 = scmp.ne.s32.totalorder %s310_s2, %s234_s10  ;;  %p238_p8 = scmp.lt.u32.totalorder %s234_s10, %s310_s2 }
 0x10b   :  { %p240_p9 = pnand %p238_p8, %p235_p7 }
 0x10d   :  { %243 = shalt.err (!%p240_p9)
}
 0x10e   :  { %s255_s15 = smov 128   ;;  %s256_s16 = smov 8  }
 0x10f   :  { %142 = dma.vmem_to_hbm [thread:$0]  %s137_s7, 512, %s310_s2, [#allocation4], %s255_s15, %s255_s15, %s256_s16  }
 0x110   :  { %248 = dma.done.wait [#allocation4], 512  }
 0x111   :  { %249 = vsyncadd [#allocation4], 4294966784 }
 0x112   :  { %146 = vsyncpa [#allocation3], 1 }
 0x113   :  { %147 = vsyncpa [#allocation6], 1 }
 0x114   :  { %148 = vsyncpa [#allocation4], 1 }

</bundles_post_ra>
